<compile_context>
chip_gen: v7x
topology: tpu7x:2x2x1
jax: 0.10.0
libtpu: 0.0.40
codegen_flags: <defaults>
</compile_context>

<pallas_src>
import math
import jax
import jax.numpy as jnp
from jax.experimental import pallas as pl
from jax.experimental.pallas import tpu as pltpu


def make_pos_embedding(emb_size: int, maxlen: int = 5000) -> jnp.ndarray:
    """Builds the (1, maxlen, emb_size) sinusoidal table exactly like __init__."""
    den = jnp.exp(-jnp.arange(0, emb_size, 2, dtype=jnp.float32)
                  * (math.log(10000.0) / emb_size))                   # (E/2,)
    pos = jnp.arange(0, maxlen, dtype=jnp.float32).reshape(maxlen, 1)  # (maxlen,1)
    angles = pos * den                                                 # (maxlen, E/2)
    pe = jnp.zeros((maxlen, emb_size), dtype=jnp.float32)
    pe = pe.at[:, 0::2].set(jnp.sin(angles))
    pe = pe.at[:, 1::2].set(jnp.cos(angles))
    return pe[None, :, :]                                              # (1, maxlen, E)


def _add_kernel(x_ref, pe_ref, o_ref):
    # DMA-bound broadcast add.  The pe table stays f32 in HBM; the cast is done
    # in-kernel (free VPU filler under the DMA stream).  Add in f32, store in the
    # activation dtype.
    o_ref[...] = (x_ref[...].astype(jnp.float32)
                  + pe_ref[...].astype(jnp.float32)).astype(o_ref.dtype)


def _budgets():
    """Generation-aware (tile_bytes, vmem_limit_bytes).

    v5e/v6e (128 MiB VMEM): 64 MiB scoped limit, ~4 MiB tiles.
    v7x     (64 MiB VMEM):  48 MiB scoped limit, ~4 MiB tiles.
    x / out double-buffered + pe ≈ 5-6 x tile -> well inside the limit.
    """
    vmem_cap = 128 * 1024 * 1024
    try:
        info = pltpu.get_tpu_info()
        vmem_cap = int(getattr(info, "vmem_capacity_bytes", vmem_cap))
    except Exception:
        pass
    vmem_limit = int(min(64 * 1024 * 1024, (vmem_cap * 3) // 4))
    tile_bytes = int(min(4 * 1024 * 1024, vmem_limit // 8))
    return tile_bytes, vmem_limit


def _forward_row_tiled(x, pos_embedding, tile_bytes, vmem_limit, donate):
    """Keep (B, S, E); squeeze the batch dim out of the kernel blocks and tile
    the sequence axis.  Lane-dense when E % 128 == 0; also the bounded fallback
    (masked E-lane stores) for large irregular shapes."""
    B, S, E = x.shape
    itemsize = jnp.dtype(x.dtype).itemsize

    # Row tile: multiple of 16 rows (legal for f32 and bf16), ~tile_bytes per tile.
    TS = (tile_bytes // max(1, E * itemsize)) // 16 * 16
    TS = int(S) if S <= max(16, TS) else int(max(16, TS))
    n_seq = pl.cdiv(S, TS)

    # Put the larger extent on the leading "parallel" axis so both v7x TCs stream.
    if B > n_seq:
        grid = (B, n_seq)
        x_spec = pl.BlockSpec((None, TS, E), lambda b, s: (b, s, 0))
        pe_spec = pl.BlockSpec((None, TS, E), lambda b, s: (0, s, 0))
        o_spec = pl.BlockSpec((None, TS, E), lambda b, s: (b, s, 0))
    else:
        grid = (n_seq, B)
        x_spec = pl.BlockSpec((None, TS, E), lambda s, b: (b, s, 0))
        pe_spec = pl.BlockSpec((None, TS, E), lambda s, b: (0, s, 0))
        o_spec = pl.BlockSpec((None, TS, E), lambda s, b: (b, s, 0))

    return pl.pallas_call(
        _add_kernel,
        out_shape=jax.ShapeDtypeStruct((B, S, E), x.dtype),
        grid_spec=pltpu.PrefetchScalarGridSpec(
            num_scalar_prefetch=0,
            grid=grid,
            in_specs=[x_spec, pe_spec],
            out_specs=o_spec,
        ),
        compiler_params=pltpu.CompilerParams(
            dimension_semantics=("parallel", "parallel"),
            vmem_limit_bytes=vmem_limit),
        input_output_aliases=({0: 0} if donate else {}),
    )(x, pos_embedding)


def _forward_lane_dense_flat(x, pos_embedding, tile_bytes, vmem_limit, donate):
    """E not a multiple of 128: flatten (S, E) -> S*E so stores are lane-dense.
    The pe table is block-indexed directly (flattened full table when S*E % 128
    == 0; a small full-row slice otherwise — the dispatcher guarantees it fits)."""
    B, S, E = x.shape
    _, maxlen, _ = pos_embedding.shape
    flat = S * E
    itemsize = jnp.dtype(x.dtype).itemsize

    x2 = x.reshape(B, flat)   # contiguous reshape, no data movement

    if flat % 128 == 0:
        # Blocks index straight into the full flattened table: no per-call slice.
        pe2 = pos_embedding.reshape(1, maxlen * E)
        TB = B if B <= 8 else 8
        TC = (tile_bytes // max(1, TB * itemsize)) // 128 * 128
        TC = int(min(flat, max(128, TC)))
    else:
        # Small irregular flat (guarded by dispatcher: 8 * flat * itemsize fits
        # the tile budget): the pe block must span the whole flattened row.
        pe2 = pos_embedding[:, :S, :].reshape(1, flat)
        TB = B if B <= 8 else 8
        TC = flat

    n_c = pl.cdiv(flat, TC)
    n_b = pl.cdiv(B, TB)

    if n_b > n_c:
        grid = (n_b, n_c)
        x_spec = pl.BlockSpec((TB, TC), lambda b, c: (b, c))
        pe_spec = pl.BlockSpec((1, TC), lambda b, c: (0, c))
        o_spec = pl.BlockSpec((TB, TC), lambda b, c: (b, c))
    else:
        grid = (n_c, n_b)
        x_spec = pl.BlockSpec((TB, TC), lambda c, b: (b, c))
        pe_spec = pl.BlockSpec((1, TC), lambda c, b: (0, c))
        o_spec = pl.BlockSpec((TB, TC), lambda c, b: (b, c))

    out = pl.pallas_call(
        _add_kernel,
        out_shape=jax.ShapeDtypeStruct((B, flat), x.dtype),
        grid_spec=pltpu.PrefetchScalarGridSpec(
            num_scalar_prefetch=0,
            grid=grid,
            in_specs=[x_spec, pe_spec],
            out_specs=o_spec,
        ),
        compiler_params=pltpu.CompilerParams(
            dimension_semantics=("parallel", "parallel"),
            vmem_limit_bytes=vmem_limit),
        input_output_aliases=({0: 0} if donate else {}),
    )(x2, pe2)
    return out.reshape(B, S, E)


def positional_encoding_forward(token_embedding: jnp.ndarray,
                                pos_embedding: jnp.ndarray,
                                dropout_p: float = 0.1,
                                *,
                                donate_input: bool = False) -> jnp.ndarray:
    """token_embedding: (B, S, E).  pos_embedding: (1, maxlen, E) f32 table."""
    B, S, E = token_embedding.shape
    flat = S * E
    itemsize = jnp.dtype(token_embedding.dtype).itemsize
    tile_bytes, vmem_limit = _budgets()

    if E % 128 == 0:
        # Typical transformer widths: naturally lane-dense row tiles.
        out = _forward_row_tiled(token_embedding, pos_embedding,
                                 tile_bytes, vmem_limit, donate_input)
    elif flat % 128 == 0 or flat * itemsize * 8 <= tile_bytes:
        # Narrow E: flatten (S,E) for lane-dense (unmasked) stores.
        out = _forward_lane_dense_flat(token_embedding, pos_embedding,
                                       tile_bytes, vmem_limit, donate_input)
    else:
        # Irregular E and S*E too large for a full flattened row: bounded row
        # tiles with full-E (masked) lane stores — no VMEM blowout.
        out = _forward_row_tiled(token_embedding, pos_embedding,
                                 tile_bytes, vmem_limit, donate_input)

    # Dropout: inference mode -> identity (nn.Dropout in eval()).
    # TODO(synk): training-mode dropout (in-kernel prng mask + 1/(1-p) scale) not emitted.
    return out


if __name__ == "__main__":
    key = jax.random.PRNGKey(0)
    dropout_p = 0.1

    # Path 1: E < 128 with S*E % 128 == 0 -> lane-dense flat path (full-table pe).
    B, S, E = 2, 8, 32
    maxlen = 64
    token_embedding = jax.random.normal(key, (B, S, E), dtype=jnp.float32)
    pos_embedding = make_pos_embedding(E, maxlen)
    out = jax.block_until_ready(
        positional_encoding_forward(token_embedding, pos_embedding, dropout_p))
    ref = token_embedding + pos_embedding[:, :S, :]
    assert out.shape == (B, S, E)
    assert jnp.allclose(out, ref, atol=1e-6), "mismatch vs reference (flat path)"

    # Path 2: E a multiple of 128 (real model widths) -> row-tiled path.
    B2, S2, E2 = 2, 16, 128
    x2 = jax.random.normal(jax.random.PRNGKey(1), (B2, S2, E2), dtype=jnp.float32)
    pe2 = make_pos_embedding(E2, 64)
    out2 = jax.block_until_ready(positional_encoding_forward(x2, pe2, dropout_p))
    assert jnp.allclose(out2, x2 + pe2[:, :S2, :], atol=1e-6), \
        "mismatch vs reference (row-tiled path)"

    # Path 3: S*E not a multiple of 128, small -> flat path with sliced pe row.
    B3, S3, E3 = 3, 10, 20
    x3 = jax.random.normal(jax.random.PRNGKey(2), (B3, S3, E3), dtype=jnp.float32)
    pe3 = make_pos_embedding(E3, 32)
    out3 = jax.block_until_ready(positional_encoding_forward(x3, pe3, dropout_p))
    assert jnp.allclose(out3, x3 + pe3[:, :S3, :], atol=1e-6), \
        "mismatch vs reference (irregular flat path)"

    print("KERNEL_OK")
</pallas_src>

<mosaic_0001>
module attributes {stable_mosaic.version = 11 : i64} {
  func.func @_add_kernel(%arg0: i32, %arg1: i32, %arg2: memref<2x256xf32, #tpu.memory_space<vmem>>, %arg3: memref<1x256xf32, #tpu.memory_space<vmem>>, %arg4: memref<2x256xf32, #tpu.memory_space<vmem>>) attributes {dimension_semantics = [#tpu.dimension_semantics<parallel>, #tpu.dimension_semantics<parallel>], iteration_bounds = array<i64: 1, 1>, scalar_prefetch = 0 : i64, scratch_operands = 0 : i64, tpu.core_type = #tpu.core_type<tc>, window_params = [{transform_indices = @transform_0, window_bounds = array<i64: 2, 256>}, {transform_indices = @transform_1, window_bounds = array<i64: 1, 256>}, {transform_indices = @transform_2, window_bounds = array<i64: 2, 256>}]} {
    %c0 = arith.constant 0 : index
    %c0_0 = arith.constant 0 : index
    %0 = vector.load %arg2[%c0, %c0_0] : memref<2x256xf32, #tpu.memory_space<vmem>>, vector<2x256xf32>
    %c0_1 = arith.constant 0 : index
    %c0_2 = arith.constant 0 : index
    %1 = vector.load %arg3[%c0_1, %c0_2] : memref<1x256xf32, #tpu.memory_space<vmem>>, vector<1x256xf32>
    %2 = vector.broadcast %1 : vector<1x256xf32> to vector<2x256xf32>
    %3 = arith.addf %0, %2 : vector<2x256xf32>
    %c0_3 = arith.constant 0 : index
    %c0_4 = arith.constant 0 : index
    %4 = vector.load %arg4[%c0_3, %c0_4] : memref<2x256xf32, #tpu.memory_space<vmem>>, vector<2x256xf32>
    tpu.vector_store %arg4[%c0_3, %c0_4], %3 {strides = array<i32>} : memref<2x256xf32, #tpu.memory_space<vmem>>, vector<2x256xf32>,
    return
  }
  func.func @transform_0(%arg0: i32, %arg1: i32) -> (i32, i32) {
    %c0_i32 = arith.constant 0 : i32
    return %arg1, %arg0 : i32, i32
  }
  func.func @transform_1(%arg0: i32, %arg1: i32) -> (i32, i32) {
    %c0_i32 = arith.constant 0 : i32
    %c0_i32_0 = arith.constant 0 : i32
    return %c0_i32, %arg0 : i32, i32
  }
  func.func @transform_2(%arg0: i32, %arg1: i32) -> (i32, i32) {
    %c0_i32 = arith.constant 0 : i32
    return %arg1, %arg0 : i32, i32
  }
}

</mosaic_0001>

<bundles_post_ra>
// kernel: tpu_custom_call.1
= control target key start
LH: loop header
LB: loop body
LE: loop exit
PB: predicated region body
PF: predicated region fallthrough
CT: control target
= control target key end

     0   :  { %7 = vsyncpa [#allocation3], 0  ;;  %s215_s0 = inlined_call_operand.hbm [shape: f32[2,256], index: 0, kind: input, shape index: {}]   ;;  %s216_s1 = inlined_call_operand.hbm [shape: f32[1,2048], index: 1, kind: input, shape index: {}]   ;;  %s217_s2 = inlined_call_operand.hbm [shape: f32[2,256], index: 2, kind: output, shape index: {}]  }
   0x1   :  { %8 = vsyncpa [#allocation6], 0 }
   0x2   :  { %9 = vsyncpa [#allocation4], 0  ;;  %s150_s9 = smov [#allocation2]   ;;  %s151_s11 = smov [#allocation5]  }
   0x3   :  { %s16_s10 = sshll.u32 %s150_s9, 4  ;;  %s26_s12 = sshll.u32 %s151_s11, 4  ;;  %s17_s10 = int_to_ptr.vmem [resolvable:$true] %s16_s10  ;;  %s169_s12 = int_to_ptr.vmem [resolvable:$true] %s26_s12 }
   0x4   :  { %s78_s15 = scalar_lea.hbm %s215_s0, 64 }
   0x5   :  { %p79_p0 = scmp.ne.s32.totalorder %s215_s0, %s78_s15  ;;  %p82_p1 = scmp.lt.u32.totalorder %s78_s15, %s215_s0 }
   0x7   :  { %p84_p2 = pnand %p82_p1, %p79_p0 }
   0x9   :  { %87 = shalt.err (!%p84_p2)
}
   0xa   :  { %s88_s20 = scalar_lea.vmem %s17_s10, 64  ;;  %p93_p4 = scmp.lt.s32.totalorder %s17_s10, %s17_s10 }
   0xb   :  { %p89_p3 = scmp.ne.s32.totalorder %s17_s10, %s88_s20  ;;  %p94_p5 = scmp.lt.s32.totalorder %s88_s20, %s88_s20 }
   0xd   :  { %p95_p6 = por %p94_p5, %p93_p4 }
   0xf   :  { %p96_p7 = pnand %p95_p6, %p89_p3 }
  0x11   :  { %99 = shalt.err (!%p96_p7)
}
  0x12   :  { %19 = dma.hbm_to_vmem [thread:$0]  %s215_s0, 64, %s17_s10, [#allocation3]  }
  0x13   :  { %s100_s25 = scalar_lea.hbm %s216_s1, 32  ;;  %s102_s30 = scalar_lea.hbm %s216_s1, 256 }
  0x14   :  { %p101_p8 = scmp.ne.s32.totalorder %s216_s1, %s100_s25  ;;  %p103_p9 = scmp.lt.u32.totalorder %s102_s30, %s100_s25 }
  0x15   :  { %p104_p10 = scmp.lt.u32.totalorder %s100_s25, %s216_s1 }
  0x17   :  { %p105_p11 = por %p104_p10, %p103_p9 }
  0x19   :  { %p106_p12 = pnand %p105_p11, %p101_p8 }
  0x1b   :  { %109 = shalt.err (!%p106_p12)
}
  0x1c   :  { %s110_s0 = scalar_lea.vmem %s169_s12, 32  ;;  %p115_p0 = scmp.lt.s32.totalorder %s169_s12, %s169_s12 }
  0x1d   :  { %p111_p13 = scmp.ne.s32.totalorder %s169_s12, %s110_s0  ;;  %p116_p1 = scmp.lt.s32.totalorder %s110_s0, %s110_s0 }
  0x1f   :  { %p117_p2 = por %p116_p1, %p115_p0 }
  0x21   :  { %p118_p3 = pnand %p117_p2, %p111_p13 }
  0x23   :  { %121 = shalt.err (!%p118_p3)
}
  0x24   :  { %29 = dma.hbm_to_vmem [thread:$0]  %s216_s1, 32, %s169_s12, [#allocation6]  }
  0x25   :  { %144 = dma.done.wait [#allocation3], 64  }
  0x26   :  { %145 = vsyncadd [#allocation3], 4294967232 }
  0x27   :  { %146 = dma.done.wait [#allocation6], 32  }
  0x28   :  { %147 = vsyncadd [#allocation6], 4294967264  ;;  %v39_v0 = vlaneseq  ;;  %v152_v1 = vmov 1983009808   ;;  %v37_v7 = vld [vmem:[#allocation5] sm:$0x3] }
  0x29   :  { %v49_v2 = vunpack.c.l.s4 %v152_v1  ;;  %v36_v12 = vld [vmem:[#allocation2] sm:$0xf]  ;;  %s153_s7 = smov [#allocation7]  }
  0x2a   :  { %v40_v3 = vshrl.u32 %v39_v0, 7  ;;  %s64_s8 = sshll.u32 %s153_s7, 4  ;;  %s65_s8 = int_to_ptr.vmem [resolvable:$true] %s64_s8 }
  0x2b   :  { %v50_v6 = vunpack.c.0.s8 %v49_v2  ;;  %s122_s1 = scalar_lea.vmem %s65_s8, 64  ;;  %p127_p5 = scmp.lt.s32.totalorder %s65_s8, %s65_s8 }
  0x2c   :  { %v41_v4 = vsub.s32 0, %v40_v3  ;;  %v45_v5 = vsub.s32 1, %v40_v3  ;;  %p123_p4 = scmp.ne.s32.totalorder %s65_s8, %s122_s1  ;;  %p128_p6 = scmp.lt.s32.totalorder %s122_s1, %s122_s1 }
  0x2d   :  { %v53_v10 = vsub.s32 %v50_v6, %v40_v3 }
  0x2e   :  { %v42_v8 = vrot.slane %v37_v7, %v41_v4  ;;  %v46_v9 = vrot.slane %v37_v7, %v45_v5  ;;  %p129_p7 = por %p128_p6, %p127_p5 }
  0x30   :  { %v47_v11 = vcombine.low %v42_v8, %v46_v9  ;;  %p130_p8 = pnand %p129_p7, %p123_p4 }
  0x32   :  { %v54_v13 = vrot.slane %v47_v11, %v53_v10 }
  0x34   :  { %v56_v14 = vadd.f32 %v54_v13, %v36_v12 }
  0x36   :  { %57 = vst [vmem:[#allocation7] sm:$0xf] %v56_v14 }
  0x37   :  { %133 = shalt.err (!%p130_p8)
}
  0x38   :  { %s134_s11 = scalar_lea.hbm %s217_s2, 64 }
  0x39   :  { %p135_p9 = scmp.ne.s32.totalorder %s217_s2, %s134_s11  ;;  %p138_p10 = scmp.lt.u32.totalorder %s134_s11, %s217_s2 }
  0x3b   :  { %p140_p11 = pnand %p138_p10, %p135_p9 }
  0x3d   :  { %143 = shalt.err (!%p140_p11)
}
  0x3e   :  { %67 = dma.vmem_to_hbm [thread:$0]  %s65_s8, 64, %s217_s2, [#allocation4]  }
  0x3f   :  { %148 = dma.done.wait [#allocation4], 64  }
  0x40   :  { %149 = vsyncadd [#allocation4], 4294967232 }
  0x41   :  { %71 = vsyncpa [#allocation3], 1 }
  0x42   :  { %72 = vsyncpa [#allocation6], 1 }
  0x43   :  { %73 = vsyncpa [#allocation4], 1 }

</bundles_post_ra>
